<compile_context>
chip_gen: v5e
topology: v5e:2x2
jax: 0.10.0
libtpu: 0.0.40
codegen_flags: <defaults>
</compile_context>

<pallas_src>
import math

import jax
import jax.numpy as jnp
from jax.experimental import pallas as pl
from jax.experimental.pallas import tpu as pltpu

_INV_SQRT2 = 1.0 / math.sqrt(2.0)
_LN_EPS = 1e-12


def _round_up(x, m):
    return (x + m - 1) // m * m


def _sublane_multiple(*dtypes):
    """Sublane granularity: 8 for 32-bit, 16 for bf16, 32 for int8."""
    return max(max(8, 32 // jnp.dtype(d).itemsize) for d in dtypes)


def _vmem_capacity_bytes(default=64 << 20):
    fn = getattr(pltpu, "get_tpu_info", None)
    if fn is None:
        return default
    try:
        cap = getattr(fn(), "vmem_capacity_bytes", None)
        return int(cap) if cap else default
    except Exception:
        return default


def _vmem_limit_bytes(estimate):
    cap = _vmem_capacity_bytes()
    # Leave headroom for compiler-internal scratch: ~48 MiB on 64 MiB v7x,
    # ~112 MiB on 128 MiB v5e/v6e.
    ceiling = max(cap - (16 << 20), (cap * 3) // 4)
    return int(min(max(int(estimate * 1.5) + (4 << 20), 32 << 20), ceiling))


# --------------------------------------------------------------------------
# Kernels
# --------------------------------------------------------------------------

def _transform_kernel(x_ref, wdt_ref, bd_ref, gamma_ref, beta_ref, h_ref):
    """dense -> BERT gelu -> BertLayerNorm for one [tm, H] row tile."""
    # nn.Linear is x @ W.T + b; W was pre-transposed to [in, out] in the
    # prepare step so this is a plain [M,K]@[K,N] MXU matmul.
    x = x_ref[...].astype(wdt_ref.dtype)
    h = jnp.dot(x, wdt_ref[...], preferred_element_type=jnp.float32)
    h = h + bd_ref[...]
    # gelu(x) = x * 0.5 * (1 + erf(x / sqrt(2)))   (erf variant, f32 on VPU/EUP)
    h = h * 0.5 * (1.0 + jax.lax.erf(h * _INV_SQRT2))
    # BertLayerNorm (TF style: eps inside the sqrt).
    u = jnp.mean(h, axis=-1, keepdims=True)
    s = jnp.mean((h - u) ** 2, axis=-1, keepdims=True)
    h = (h - u) / jnp.sqrt(s + _LN_EPS)
    h = gamma_ref[...] * h + beta_ref[...]
    h_ref[...] = h.astype(h_ref.dtype)


def _decoder_kernel(h_ref, embt_ref, dbias_ref, out_ref):
    """logits tile = h @ E^T + bias; E pre-transposed to [H, V] (MXU-natural)."""
    logits = jnp.dot(h_ref[...], embt_ref[...],
                     preferred_element_type=jnp.float32)
    out_ref[...] = (logits + dbias_ref[...]).astype(out_ref.dtype)


# --------------------------------------------------------------------------
# Wrappers
# --------------------------------------------------------------------------

def prepare_lm_head_params(params, *, decoder_dtype=jnp.bfloat16, tv=1024):
    """One-time parameter prep: cast, transpose, pad. Call once, reuse per step.

    Hoisting this out of the per-call path avoids re-casting / re-padding the
    [V, H] embedding every forward (a full extra HBM round trip at real vocab
    sizes).
    """
    decoder_dtype = jnp.dtype(decoder_dtype)
    wd = jnp.asarray(params["dense_weight"])            # [out, in] = [H, H]
    H = wd.shape[0]
    emb = jnp.asarray(params["embedding_weight"])        # [V, H]
    V = emb.shape[0]

    tv_eff = int(min(tv, _round_up(V, 128)))
    V_pad = int(_round_up(V, tv_eff))

    emb_t = emb.astype(decoder_dtype).T                   # [H, V]  (K, N)
    dbias = jnp.asarray(params["decoder_bias"], jnp.float32)
    if V_pad != V:
        emb_t = jnp.pad(emb_t, ((0, 0), (0, V_pad - V)))
        dbias = jnp.pad(dbias, (0, V_pad - V))

    return {
        "dense_weight_t": wd.astype(decoder_dtype).T,      # [in, out]
        "dense_bias": jnp.asarray(params["dense_bias"], jnp.float32).reshape(1, H),
        "ln_weight": jnp.asarray(params["ln_weight"], jnp.float32).reshape(1, H),
        "ln_bias": jnp.asarray(params["ln_bias"], jnp.float32).reshape(1, H),
        "emb_t": emb_t,                                     # [H, V_pad]
        "decoder_bias": dbias.reshape(1, V_pad),
        "decoder_dtype": decoder_dtype,
        "H": H,
        "V": V,
        "V_pad": V_pad,
        "tv": tv_eff,
    }


def bert_lm_prediction_head(hidden_states, prepped, *, tm=1024,
                            out_dtype=jnp.bfloat16, min_m_tiles=2,
                            return_padded=False):
    """hidden_states [B, S, H] -> logits [B, S, V] in out_dtype.

    out_dtype defaults to bf16 to halve the dominant [M, V] output HBM stream;
    pass jnp.float32 for consumers doing f32-sensitive loss math.
    """
    B, S, H = hidden_states.shape
    assert H == prepped["H"]
    V, V_pad, tv = prepped["V"], prepped["V_pad"], prepped["tv"]
    decoder_dtype = prepped["decoder_dtype"]
    out_dtype = jnp.dtype(out_dtype)

    M = B * S
    sm = _sublane_multiple(hidden_states.dtype, decoder_dtype, out_dtype)
    tm_eff = min(tm, _round_up(M, sm))
    if min_m_tiles > 1:
        # Keep >= min_m_tiles row tiles so the parallel M axis can feed both
        # TensorCores on v7x megacore parts even for short batches.
        tm_eff = min(tm_eff, max(_round_up(pl.cdiv(M, min_m_tiles), sm), sm))
    M_pad = _round_up(M, tm_eff)

    x2d = hidden_states.reshape(M, H)
    if M_pad != M:
        x2d = jnp.pad(x2d, ((0, M_pad - M), (0, 0)))

    m_tiles = M_pad // tm_eff
    v_tiles = V_pad // tv

    x_bytes = jnp.dtype(x2d.dtype).itemsize
    d_bytes = decoder_dtype.itemsize
    o_bytes = out_dtype.itemsize

    # ---- Stage 1: dense -> gelu -> layernorm; h stored in decoder_dtype ----
    xfm_est = (2 * tm_eff * H * x_bytes + 2 * H * H * d_bytes
               + 2 * 3 * H * 4 + 2 * tm_eff * H * d_bytes)
    h = pl.pallas_call(
        _transform_kernel,
        out_shape=jax.ShapeDtypeStruct((M_pad, H), decoder_dtype),
        grid_spec=pltpu.PrefetchScalarGridSpec(
            num_scalar_prefetch=0,
            grid=(m_tiles,),
            in_specs=[
                pl.BlockSpec((tm_eff, H), lambda i: (i, 0)),   # x tile
                pl.BlockSpec((H, H), lambda i: (0, 0)),        # dense W^T
                pl.BlockSpec((1, H), lambda i: (0, 0)),        # dense bias
                pl.BlockSpec((1, H), lambda i: (0, 0)),        # LN gamma
                pl.BlockSpec((1, H), lambda i: (0, 0)),        # LN beta
            ],
            out_specs=pl.BlockSpec((tm_eff, H), lambda i: (i, 0)),
        ),
        compiler_params=pltpu.CompilerParams(
            dimension_semantics=("parallel",),
            vmem_limit_bytes=_vmem_limit_bytes(xfm_est),
        ),
    )(x2d, prepped["dense_weight_t"], prepped["dense_bias"],
      prepped["ln_weight"], prepped["ln_bias"])

    # ---- Stage 2: decoder matmul h @ E^T + bias, tiled over (M, V) ----
    dec_est = (2 * tm_eff * H * d_bytes + 2 * H * tv * d_bytes
               + 2 * tv * 4 + 2 * tm_eff * tv * o_bytes)
    out = pl.pallas_call(
        _decoder_kernel,
        out_shape=jax.ShapeDtypeStruct((M_pad, V_pad), out_dtype),
        grid_spec=pltpu.PrefetchScalarGridSpec(
            num_scalar_prefetch=0,
            grid=(m_tiles, v_tiles),
            in_specs=[
                pl.BlockSpec((tm_eff, H), lambda i, j: (i, 0)),   # h tile
                pl.BlockSpec((H, tv), lambda i, j: (0, j)),       # emb^T tile
                pl.BlockSpec((1, tv), lambda i, j: (0, j)),       # decoder bias
            ],
            out_specs=pl.BlockSpec((tm_eff, tv), lambda i, j: (i, j)),
        ),
        compiler_params=pltpu.CompilerParams(
            dimension_semantics=("parallel", "parallel"),
            vmem_limit_bytes=_vmem_limit_bytes(dec_est),
        ),
    )(h, prepped["emb_t"], prepped["decoder_bias"])

    if return_padded:
        # Caller must mask padded rows (>= M) and padded vocab columns (>= V,
        # logits exactly 0 there) before softmax / loss.
        return out

    if M_pad != M or V_pad != V:
        # TODO(synk): fuse the consumer (softmax / cross-entropy) so this padded
        # slice never materializes a second [M, V] copy in HBM.
        out = out[:M, :V]
    return out.reshape(B, S, V)


# --------------------------------------------------------------------------
# Reference & test
# --------------------------------------------------------------------------

def _reference(hidden_states, params):
    """Pure-JAX reference reproducing the PyTorch forward (all f32)."""
    h = hidden_states @ params["dense_weight"].T + params["dense_bias"]
    h = h * 0.5 * (1.0 + jax.lax.erf(h / jnp.sqrt(2.0)))
    u = jnp.mean(h, axis=-1, keepdims=True)
    s = jnp.mean((h - u) ** 2, axis=-1, keepdims=True)
    h = (h - u) / jnp.sqrt(s + 1e-12)
    h = params["ln_weight"] * h + params["ln_bias"]
    return h @ params["embedding_weight"].T + params["decoder_bias"]


if __name__ == "__main__":
    # Small config: batch=2, seq=8, hidden=32, vocab=256.
    B, S, H, V = 2, 8, 32, 256

    key = jax.random.PRNGKey(0)
    k_x, k_wd, k_bd, k_emb = jax.random.split(key, 4)

    hidden_states = jax.random.normal(k_x, (B, S, H), dtype=jnp.float32)

    params = {
        "dense_weight": jax.random.normal(k_wd, (H, H), jnp.float32) * 0.05,
        "dense_bias": jax.random.normal(k_bd, (H,), jnp.float32) * 0.05,
        "ln_weight": jnp.ones((H,), jnp.float32),      # BertLayerNorm init
        "ln_bias": jnp.zeros((H,), jnp.float32),
        "embedding_weight": jax.random.normal(k_emb, (V, H), jnp.float32) * 0.05,
        "decoder_bias": jnp.zeros((V,), jnp.float32),  # nn.Parameter(zeros(V))
    }

    ref = _reference(hidden_states, params)

    # f32-everything path: tight structural correctness check.
    prepped_f32 = prepare_lm_head_params(params, decoder_dtype=jnp.float32)
    logits_f32 = jax.block_until_ready(
        bert_lm_prediction_head(hidden_states, prepped_f32,
                                out_dtype=jnp.float32))
    assert logits_f32.shape == (B, S, V)
    assert jnp.allclose(logits_f32, ref, atol=1e-4, rtol=1e-4), "f32 mismatch"

    # Default fast path: bf16 weights / h / embedding / logits with f32
    # accumulation. Looser tolerance (bf16 quantization of h and logits).
    prepped = prepare_lm_head_params(params)
    logits = jax.block_until_ready(
        bert_lm_prediction_head(hidden_states, prepped))
    assert logits.shape == (B, S, V)
    assert logits.dtype == jnp.bfloat16
    assert jnp.allclose(logits.astype(jnp.float32), ref,
                        atol=2e-2, rtol=2e-2), "bf16 mismatch"

    print("KERNEL_OK")
</pallas_src>

<mosaic_0001>
module attributes {stable_mosaic.version = 11 : i64} {
  func.func @_transform_kernel(%arg0: i32, %arg1: memref<8x32xf32, #tpu.memory_space<vmem>>, %arg2: memref<32x32xf32, #tpu.memory_space<vmem>>, %arg3: memref<1x32xf32, #tpu.memory_space<vmem>>, %arg4: memref<1x32xf32, #tpu.memory_space<vmem>>, %arg5: memref<1x32xf32, #tpu.memory_space<vmem>>, %arg6: memref<8x32xf32, #tpu.memory_space<vmem>>) attributes {dimension_semantics = [#tpu.dimension_semantics<parallel>], iteration_bounds = array<i64: 2>, scalar_prefetch = 0 : i64, scratch_operands = 0 : i64, tpu.core_type = #tpu.core_type<tc>, window_params = [{transform_indices = @transform_0, window_bounds = array<i64: 8, 32>}, {pipeline_mode = #tpu.pipeline_mode<synchronous>, transform_indices = @transform_1, window_bounds = array<i64: 32, 32>}, {pipeline_mode = #tpu.pipeline_mode<synchronous>, transform_indices = @transform_2, window_bounds = array<i64: 1, 32>}, {pipeline_mode = #tpu.pipeline_mode<synchronous>, transform_indices = @transform_3, window_bounds = array<i64: 1, 32>}, {pipeline_mode = #tpu.pipeline_mode<synchronous>, transform_indices = @transform_4, window_bounds = array<i64: 1, 32>}, {transform_indices = @transform_5, window_bounds = array<i64: 8, 32>}]} {
    %c0 = arith.constant 0 : index
    %c0_0 = arith.constant 0 : index
    %0 = vector.load %arg1[%c0, %c0_0] : memref<8x32xf32, #tpu.memory_space<vmem>>, vector<8x32xf32>
    %c0_1 = arith.constant 0 : index
    %c0_2 = arith.constant 0 : index
    %1 = vector.load %arg2[%c0_1, %c0_2] : memref<32x32xf32, #tpu.memory_space<vmem>>, vector<32x32xf32>
    %cst = arith.constant dense<0.000000e+00> : vector<8x32xf32>
    %2 = tpu.matmul %0, %1, %cst {dimension_numbers = #tpu.dot_dimension_numbers<[1], [0], [0], [1], [0, 0, 1, 1], [], []>} : vector<8x32xf32>, vector<32x32xf32>, vector<8x32xf32> -> vector<8x32xf32>
    %c0_3 = arith.constant 0 : index
    %c0_4 = arith.constant 0 : index
    %3 = vector.load %arg3[%c0_3, %c0_4] : memref<1x32xf32, #tpu.memory_space<vmem>>, vector<1x32xf32>
    %4 = vector.broadcast %3 : vector<1x32xf32> to vector<8x32xf32>
    %5 = arith.addf %2, %4 : vector<8x32xf32>
    %cst_5 = arith.constant 5.000000e-01 : f32
    %6 = vector.broadcast %cst_5 : f32 to vector<8x32xf32>
    %7 = arith.mulf %5, %6 : vector<8x32xf32>
    %cst_6 = arith.constant 0.707106769 : f32
    %8 = vector.broadcast %cst_6 : f32 to vector<8x32xf32>
    %9 = arith.mulf %5, %8 : vector<8x32xf32>
    %10 = math.erf %9 : vector<8x32xf32>
    %cst_7 = arith.constant 1.000000e+00 : f32
    %11 = vector.broadcast %cst_7 : f32 to vector<8x32xf32>
    %12 = arith.addf %11, %10 : vector<8x32xf32>
    %13 = arith.mulf %7, %12 : vector<8x32xf32>
    %cst_8 = arith.constant dense<0.000000e+00> : vector<8xf32>
    %14 = vector.multi_reduction <add>, %13, %cst_8 [1] : vector<8x32xf32> to vector<8xf32>
    %15 = vector.shape_cast %14 : vector<8xf32> to vector<8x1xf32>
    %cst_9 = arith.constant 3.200000e+01 : f32
    %16 = vector.broadcast %cst_9 : f32 to vector<8x1xf32>
    %17 = arith.divf %15, %16 : vector<8x1xf32>
    %18 = vector.broadcast %17 : vector<8x1xf32> to vector<8x32xf32>
    %19 = arith.subf %13, %18 : vector<8x32xf32>
    %20 = arith.mulf %19, %19 : vector<8x32xf32>
    %cst_10 = arith.constant dense<0.000000e+00> : vector<8xf32>
    %21 = vector.multi_reduction <add>, %20, %cst_10 [1] : vector<8x32xf32> to vector<8xf32>
    %22 = vector.shape_cast %21 : vector<8xf32> to vector<8x1xf32>
    %cst_11 = arith.constant 3.200000e+01 : f32
    %23 = vector.broadcast %cst_11 : f32 to vector<8x1xf32>
    %24 = arith.divf %22, %23 : vector<8x1xf32>
    %25 = vector.broadcast %17 : vector<8x1xf32> to vector<8x32xf32>
    %26 = arith.subf %13, %25 : vector<8x32xf32>
    %cst_12 = arith.constant 9.99999996E-13 : f32
    %27 = vector.broadcast %cst_12 : f32 to vector<8x1xf32>
    %28 = arith.addf %24, %27 : vector<8x1xf32>
    %29 = math.sqrt %28 : vector<8x1xf32>
    %30 = vector.broadcast %29 : vector<8x1xf32> to vector<8x32xf32>
    %31 = arith.divf %26, %30 : vector<8x32xf32>
    %c0_13 = arith.constant 0 : index
    %c0_14 = arith.constant 0 : index
    %32 = vector.load %arg4[%c0_13, %c0_14] : memref<1x32xf32, #tpu.memory_space<vmem>>, vector<1x32xf32>
    %33 = vector.broadcast %32 : vector<1x32xf32> to vector<8x32xf32>
    %34 = arith.mulf %33, %31 : vector<8x32xf32>
    %c0_15 = arith.constant 0 : index
    %c0_16 = arith.constant 0 : index
    %35 = vector.load %arg5[%c0_15, %c0_16] : memref<1x32xf32, #tpu.memory_space<vmem>>, vector<1x32xf32>
    %36 = vector.broadcast %35 : vector<1x32xf32> to vector<8x32xf32>
    %37 = arith.addf %34, %36 : vector<8x32xf32>
    %c0_17 = arith.constant 0 : index
    %c0_18 = arith.constant 0 : index
    %38 = vector.load %arg6[%c0_17, %c0_18] : memref<8x32xf32, #tpu.memory_space<vmem>>, vector<8x32xf32>
    tpu.vector_store %arg6[%c0_17, %c0_18], %37 {strides = array<i32>} : memref<8x32xf32, #tpu.memory_space<vmem>>, vector<8x32xf32>,
    return
  }
  func.func @transform_0(%arg0: i32) -> (i32, i32) {
    %c0_i32 = arith.constant 0 : i32
    %c0_i32_0 = arith.constant 0 : i32
    return %arg0, %c0_i32 : i32, i32
  }
  func.func @transform_1(%arg0: i32) -> (i32, i32) {
    %c0_i32 = arith.constant 0 : i32
    %c0_i32_0 = arith.constant 0 : i32
    %c0_i32_1 = arith.constant 0 : i32
    return %c0_i32, %c0_i32_0 : i32, i32
  }
  func.func @transform_2(%arg0: i32) -> (i32, i32) {
    %c0_i32 = arith.constant 0 : i32
    %c0_i32_0 = arith.constant 0 : i32
    %c0_i32_1 = arith.constant 0 : i32
    return %c0_i32, %c0_i32_0 : i32, i32
  }
  func.func @transform_3(%arg0: i32) -> (i32, i32) {
    %c0_i32 = arith.constant 0 : i32
    %c0_i32_0 = arith.constant 0 : i32
    %c0_i32_1 = arith.constant 0 : i32
    return %c0_i32, %c0_i32_0 : i32, i32
  }
  func.func @transform_4(%arg0: i32) -> (i32, i32) {
    %c0_i32 = arith.constant 0 : i32
    %c0_i32_0 = arith.constant 0 : i32
    %c0_i32_1 = arith.constant 0 : i32
    return %c0_i32, %c0_i32_0 : i32, i32
  }
  func.func @transform_5(%arg0: i32) -> (i32, i32) {
    %c0_i32 = arith.constant 0 : i32
    %c0_i32_0 = arith.constant 0 : i32
    return %arg0, %c0_i32 : i32, i32
  }
}

</mosaic_0001>

<bundles_post_ra>
// kernel: tpu_custom_call.1
= control target key start
LH: loop header
LB: loop body
LE: loop exit
PB: predicated region body
PF: predicated region fallthrough
CT: control target
= control target key end

     0   :  { %10 = vsyncpa [#allocation3], 0  ;;  %s894_s0 = inlined_call_operand.hbm [shape: f32[16,32], index: 0, kind: input, shape index: {}]   ;;  %s895_s1 = inlined_call_operand.hbm [shape: f32[32,32], index: 1, kind: input, shape index: {}]   ;;  %s896_s2 = inlined_call_operand.vmem [shape: f32[1,32], index: 2, kind: input, shape index: {}]   ;;  %s897_s3 = inlined_call_operand.vmem [shape: f32[1,32], index: 3, kind: input, shape index: {}]   ;;  %s898_s4 = inlined_call_operand.vmem [shape: f32[1,32], index: 4, kind: input, shape index: {}]   ;;  %s899_s5 = inlined_call_operand.hbm [shape: f32[16,32], index: 5, kind: output, shape index: {}]  }
   0x1   :  { %12 = vsyncpa [#allocation3 + $0x1], 0 }
   0x2   :  { %13 = vsyncpa [#allocation6], 0 }
   0x3   :  { %14 = vsyncpa [#allocation4], 0 }
   0x4   :  { %16 = vsyncpa [#allocation4 + $0x1], 0  ;;  %s741_s18 = smov 0   ;;  %s743_s19 = smov 0  }
   0x5   :  { %s745_s20 = smov 0   ;;  %s747_s21 = smov 0  }
   0x6 LB: > { %s174_s24 = sshll.u32 %s895_s1, 4  ;;  %s765_s25 = sadd.s32 4294967295, %s705_s21   ;;  %s705_s21 = sphi %s747_s21, %s909_s21   ;;  %s701_s20 = sphi %s745_s20, %s908_s20   ;;  %s697_s19 = sphi %s743_s19, %s907_s19   ;;  %s693_s18 = sphi %s741_s18, %s906_s18   ;;  %s175_s24 = int_to_ptr.hbm [resolvable:$true] %s174_s24 }
   0x7   : > { %p489_p0 = scmp.ge.s32.totalorder %s705_s21, 1  ;;  %p43_p1 = scmp.eq.s32.totalorder %s765_s25, 0 }
   0x8   : > { %p163_p2 = scmp.lt.s32.totalorder %s705_s21, 3  ;;  %s707_s27 = smov [#allocation5]  }
   0x9   : > { %s176_s28 = sshll.u32 %s707_s27, 4  ;;  %s708_s29 = smov 128   ;;  %s177_s28 = int_to_ptr.vmem [resolvable:$true] %s176_s28 }
   0xa   : > { %p770_p3 = pnand %p489_p0, %p163_p2  ;;  %s709_s30 = smov 8  }
   0xb   : > { %s488_s6 = sadd.s32 4294967294, %s705_s21   ;;  %s781_s7 = sadd.s32 1, %s705_s21  }
   0xc   : > { %p512_p4 = pneg %p770_p3  ;;  %s29_s8 = sadd.s32 1, %s701_s20 }
   0xd   : > { %s26_s9 = ssub.s32 %s705_s21, %s781_s7  ;;  %p36_p7 = scmp.ne.s32.totalorder %s701_s20, %s697_s19 }
   0xe   : > { %p513_p6 = pnand %p512_p4, %p43_p1  ;;  %p27_p8 = scmp.eq.s32.totalorder %s26_s9, 0 }
   0xf   : > { %p37_p9 = scmp.eq.s32.totalorder %s705_s21, 0  ;;  %p42_p10 = scmp.ne.s32.totalorder %s697_s19, %s693_s18 }
  0x10   : > { %515 = dma.hbm_to_vmem [thread:$0]  (!%p513_p6), %s175_s24, 512, %s177_s28, [#allocation6], %s708_s29, %s708_s29, %s709_s30  }
  0x11   : > { %p150_p11 = scmp.eq.s32.totalorder %s765_s25, 1  ;;  %p797_p12 = por %p43_p1, %p42_p10 }
  0x12   : > { %s793_s10 = scalar_select %p27_p8, %s701_s20, %s29_s8  }
  0x13   : > { %p801_p13 = por %p150_p11, %p36_p7  ;;  %p156_p0 = scmp.eq.s32.totalorder %s488_s6, 1 }
  0x14   : > { %p38_p2 = por %p37_p9, %p36_p7  ;;  %s199_s13 = sand.u32 1, %s701_s20  }
  0x15   : > { %p806_p4 = por %p156_p0, %p42_p10  ;;  %p525_p6 = scmp.lt.s32.totalorder %s705_s21, 2 }
  0x16   : > { %s492_s15 = sshll.u32 %s199_s13, 3  ;;  %s493_s16 = sshll.u32 %s705_s21, 3 }
  0x17   : > { %s207_s23 = scalar_lea.hbm %s894_s0, %s493_s16  ;;  %s203_s27 = scalar_lea.vmem [#allocation2], %s492_s15 }
  0x18   : > { %s209_s24 = sshll.u32 %s207_s23, 4  ;;  %s211_s28 = sshll.u32 %s203_s27, 4  ;;  %s210_s24 = int_to_ptr.hbm [resolvable:$true] %s209_s24  ;;  %s212_s28 = int_to_ptr.vmem [resolvable:$true] %s211_s28 }
  0x19   : > { %p815_p8 = pnand %p525_p6, %p38_p2  ;;  %s200_s30 = scalar_lea.sflag [#allocation3], %s199_s13 }
  0x1a   : > { %s605_s6 = sshra.s32 %s210_s24, 4  ;;  %s612_s15 = scalar_lea.hbm %s894_s0, 16  ;;  %s606_s6 = int_to_ptr.hbm [resolvable:$true] %s605_s6 }
  0x1b   : > { %s607_s8 = scalar_lea.hbm %s606_s6, 8  ;;  %p609_p9 = pneg %p815_p8 }
  0x1c   : > { %p608_p7 = scmp.ne.s32.totalorder %s606_s6, %s607_s8  ;;  %p613_p0 = scmp.lt.s32.totalorder %s606_s6, %s894_s0 }
  0x1d   : > { %p614_p2 = scmp.lt.s32.totalorder %s612_s15, %s607_s8 }
  0x1e   : > { %p610_p10 = pnand %p609_p9, %p608_p7 }
  0x1f   : > { %p615_p6 = por %p614_p2, %p613_p0 }
  0x20   : > { %p611_p11 = pneg %p610_p10 }
  0x22   : > { %p616_p5 = pnand %p615_p6, %p611_p11 }
  0x24   : > { %619 = shalt.err (!%p616_p5)
}
  0x25   : > { %519 = dma.hbm_to_vmem [thread:$0]  (!%p815_p8), %s210_s24, 128, %s212_s28, %s200_s30  }
  0x26   : > { %220 = sbr.rel (%p770_p3) target bundleno = 524 (0x20c), region = 40  ;;  %s832_s13 = sand.u32 (!%p770_p3), 1, %s697_s19  }
  0x27   : > { %s495_s23 = sshll.u32 (!%p770_p3), %s832_s13, 3  ;;  %s223_s27 = scalar_lea.sflag (!%p770_p3), [#allocation3], %s832_s13 }
  0x28   : > { %s226_s6 = scalar_lea.vmem (!%p770_p3), [#allocation2], %s495_s23 }
  0x2b   : > { %680 = dma.done.wait (%p797_p12), %s223_s27, 128  }
  0x2c   : > { %682 = vsyncadd (%p797_p12), %s223_s27, 4294967168 }
  0x2d   : > { %684 = dma.done.wait (%p43_p1), [#allocation6], 512  }
  0x2e   : > { %686 = vsyncadd (%p43_p1), [#allocation6], 4294966784  ;;  %v263_v0 = vld [vmem:[#allocation5 + $0x18] sm:$0xff]  ;;  %v262_v1 = vld [vmem:[#allocation5 + $0x10] sm:$0xff]  ;;  %vm268_vm0 = vcmask 261120   ;;  %v710_v48 = vmov 32.0  }
  0x2f   : > { %284 = vmatpush.msra.mxu0 %v263_v0  ;;  %v261_v2 = vld [vmem:[#allocation5 + $0x8] sm:$0xff]  ;;  %v260_v3 = vld [vmem:[#allocation5] sm:$0xff]  ;;  %v259_v4 = vld [vmem:[%s226_s6] sm:$0xff]  ;;  %s501_s24 = sshll.u32 %s765_s25, 3  ;;  %s258_s15 = scalar_lea.vmem [#allocation7], %s495_s23 }
  0x30   : > { %v564_v5 = vld [vmem:[%s896_s2] ss:$0 sm:$0xff]  ;;  %s403_s9 = scalar_lea.hbm %s899_s5, %s501_s24  ;;  %s405_s17 = sshll.u32 %s258_s15, 4  ;;  %s406_s17 = int_to_ptr.vmem [resolvable:$true] %s405_s17 }
  0x31   : > { %285 = vmatpush.msra.mxu0 %v262_v1  ;;  %s407_s22 = sshll.u32 %s403_s9, 4  ;;  %s393_s27 = scalar_lea.sflag [#allocation4], %s832_s13  ;;  %s408_s22 = int_to_ptr.hbm [resolvable:$true] %s407_s22 }
  0x32   : > { %s649_s6 = sshra.s32 %s408_s22, 4  ;;  %s655_s23 = scalar_lea.hbm %s899_s5, 16  ;;  %s650_s6 = int_to_ptr.hbm [resolvable:$true] %s649_s6 }
  0x33   : > { %286 = vmatpush.msra.mxu0 %v261_v2  ;;  %s651_s26 = scalar_lea.hbm %s650_s6, 8  ;;  %p656_p12 = scmp.lt.s32.totalorder %s650_s6, %s899_s5 }
  0x34   : > { %p652_p1 = scmp.ne.s32.totalorder %s650_s6, %s651_s26  ;;  %p657_p8 = scmp.lt.s32.totalorder %s655_s23, %s651_s26 }
  0x35   : > { %287 = vmatpush.msra.mxu0 %v260_v3 }
  0x36   : > { %498 = vmatmul.msk.f32.vlgmr.msra.gmra.mxu0 %vm268_vm0, %v259_v4  ;;  %p653_p3 = pnand %p652_p1, %p801_p13  ;;  %p658_p7 = por %p657_p8, %p656_p12 }
  0x38   : > { %p654_p5 = pneg %p653_p3 }
  0x3a   : > { %p659_p9 = pnand %p658_p7, %p654_p5 }
  0xb3   : > { %v289_v6 = vpop.f32.mrf.mxu0 }
  0xb4   : > { %v290_v7 = vadd.f32 %v564_v5, %v289_v6 }
  0xb6   : > { %v293_v8 = vmul.f32 0.70710677, %v290_v7  ;;  %v292_v44 = vmul.f32 0.5, %v290_v7 }
  0xb8   : > { %v294_v9 = vmul.f32 %v293_v8, %v293_v8 }
  0xba   : > { %v295_v10 = vmin.f32 %v294_v9, 16.0 }
  0xbc   : > { %v296_v11 = vmul.f32 2.1237322e-06, %v295_v10  ;;  %v307_v12 = vmul.f32 3.8918573e-05, %v295_v10 }
  0xbe   : > { %v297_v13 = vadd.f32 0.00028619796, %v296_v11  ;;  %v308_v14 = vadd.f32 0.001143296, %v307_v12 }
  0xc0   : > { %v298_v15 = vmul.f32 %v297_v13, %v295_v10  ;;  %v309_v16 = vmul.f32 %v308_v14, %v295_v10 }
  0xc2   : > { %v310_v17 = vadd.f32 0.014752088, %v309_v16  ;;  %v299_v18 = vadd.f32 0.0036580483, %v298_v15 }
  0xc4   : > { %v311_v19 = vmul.f32 %v310_v17, %v295_v10  ;;  %v300_v21 = vmul.f32 %v299_v18, %v295_v10  ;;  %v565_v18 = vld [vmem:[%s897_s3] ss:$0 sm:$0xff] }
  0xc6   : > { %v312_v20 = vadd.f32 0.112945676, %v311_v19  ;;  %v301_v24 = vadd.f32 0.05243302, %v300_v21  ;;  %v566_v21 = vld [vmem:[%s898_s4] ss:$0 sm:$0xff] }
  0xc8   : > { %v313_v22 = vmul.f32 %v312_v20, %v295_v10  ;;  %v302_v27 = vmul.f32 %v301_v24, %v295_v10 }
  0xca   : > { %v314_v23 = vadd.f32 0.4994258, %v313_v22  ;;  %v303_v28 = vadd.f32 0.18741608, %v302_v27 }
  0xcc   : > { %v315_v25 = vmul.f32 %v314_v23, %v295_v10  ;;  %v304_v30 = vmul.f32 %v303_v28, %v295_v10 }
  0xce   : > { %v316_v26 = vadd.f32 1.0, %v315_v25  ;;  %v305_v34 = vadd.f32 1.1283791, %v304_v30 }
  0xd0   : > { %567 = vrcp.f32 %v316_v26  ;;  %v328_v33 = vand.u32 2147483648, %v316_v26  ;;  %v326_v36 = vand.u32 2147483647, %v316_v26  ;;  %vm322_vm2 = vweird.f32 %v316_v26 }
  0xd1   : > { %v306_v39 = vmul.f32 %v305_v34, %v293_v8  ;;  %569 = vrcp.f32 %v710_v48 }
  0xd2   : > { %v329_v38 = vor.u32 1.1754944e-38, %v328_v33  ;;  %vm327_vm4 = vcmp.eq.f32.partialorder %v326_v36, 8.507059e+37 }
  0xd6   : > { %v568_v29 = vpop.eup %567 }
  0xd7   : > { %v318_v31 = vmul.f32 %v568_v29, %v316_v26  ;;  %vm323_vm1 = vweird.f32 %v568_v29  ;;  %v570_v49 = vpop.eup %569 }
  0xd8   : > { %vm324_vm3 = vmor %vm322_vm2, %vm323_vm1  ;;  %v340_v50 = vmul.f32 32.0, %v570_v49  ;;  %vm344_vm5 = vweird.f32 %v570_v49 }
  0xd9   : > { %v319_v32 = vsub.f32 1.0, %v318_v31 }
  0xda   : > { %v341_v51 = vsub.f32 1.0, %v340_v50 }
  0xdb   : > { %v320_v35 = vmul.f32 %v568_v29, %v319_v32 }
  0xdc   : > { %v342_v52 = vmul.f32 %v570_v49, %v341_v51 }
  0xdd   : > { %v321_v37 = vadd.f32 %v568_v29, %v320_v35 }
  0xde   : > { %v343_v53 = vadd.f32 %v570_v49, %v342_v52 }
  0xdf   : > { %v325_v40 = vsel %vm324_vm3, %v568_v29, %v321_v37 }
  0xe0   : > { %v330_v41 = vsel %vm327_vm4, %v329_v38, %v325_v40  ;;  %v345_v54 = vsel %vm344_vm5, %v570_v49, %v343_v53 }
  0xe1   : > { %v331_v42 = vmul.f32 %v330_v41, %v306_v39 }
  0xe3   : > { %v499_v43 = vclamps-f32 %v331_v42, 1.0 }
  0xe5   : > { %v334_v45 = vadd.f32 1.0, %v499_v43 }
  0xe7   : > { %v335_v46 = vmul.f32 %v334_v45, %v292_v44 }
  0xe9   : > { %v336_v47 = vsel %vm268_vm0, %v335_v46, 0.0 }
  0xea   : > { %337 = vadd.xlane.f32.xlu0 %v336_v47 }
 0x15d   : > { %v338_v55 = vpop.xlane.xlu0 %337 }
 0x15e   : > { %v346_v56 = vmul.f32 %v345_v54, %v338_v55 }
 0x160   : > { %v347_v57 = vsub.f32 %v335_v46, %v346_v56 }
 0x162   : > { %v348_v58 = vmul.f32 %v347_v57, %v347_v57 }
 0x164   : > { %v349_v59 = vsel %vm268_vm0, %v348_v58, 0.0 }
 0x165   : > { %350 = vadd.xlane.f32.xlu0 %v349_v59 }
 0x1d8   : > { %v351_v60 = vpop.xlane.xlu0 %350 }
 0x1d9   : > { %v352_v61 = vmul.f32 %v351_v60, %v345_v54 }
 0x1db   : > { %v353_v62 = vadd.f32 1e-12, %v352_v61 }
 0x1dd   : > { %571 = vrsqrt.f32 %v353_v62  ;;  %vm361_vm6 = vcmp.eq.f32.partialorder %v353_v62, inf  ;;  %v364_v6 = vand.u32 2147483648, %v353_v62  ;;  %vm363_vm7 = vcmp.eq.f32.partialorder %v353_v62, 0.0 }
 0x1e3   : > { %v572_v63 = vpop.eup %571 }
 0x1e4   : > { %v355_v0 = vmul.f32 %v572_v63, %v353_v62 }
 0x1e6   : > { %v356_v1 = vmul.f32 %v572_v63, %v355_v0 }
 0x1e8   : > { %v357_v2 = vmul.f32 0.5, %v356_v1 }
 0x1ea   : > { %v358_v3 = vsub.f32 1.5, %v357_v2 }
 0x1ec   : > { %v359_v4 = vmul.f32 %v572_v63, %v358_v3 }
 0x1ee   : > { %v360_v5 = vmul.f32 %v359_v4, %v353_v62 }
 0x1f0   : > { %v362_v7 = vsel %vm361_vm6, %v353_v62, %v360_v5 }
 0x1f1   : > { %v365_v8 = vsel %vm363_vm7, %v364_v6, %v362_v7 }
 0x1f2   : > { %573 = vrcp.f32 %v365_v8  ;;  %v377_v12 = vand.u32 2147483648, %v365_v8  ;;  %v375_v14 = vand.u32 2147483647, %v365_v8  ;;  %vm371_vm9 = vweird.f32 %v365_v8 }
 0x1f4   : > { %v378_v16 = vor.u32 1.1754944e-38, %v377_v12  ;;  %vm376_vm11 = vcmp.eq.f32.partialorder %v375_v14, 8.507059e+37 }
 0x1f8   : > { %v574_v9 = vpop.eup %573 }
 0x1f9   : > { %v367_v10 = vmul.f32 %v574_v9, %v365_v8  ;;  %vm372_vm8 = vweird.f32 %v574_v9 }
 0x1fa   : > { %vm373_vm10 = vmor %vm371_vm9, %vm372_vm8 }
 0x1fb   : > { %v368_v11 = vsub.f32 1.0, %v367_v10 }
 0x1fd   : > { %v369_v13 = vmul.f32 %v574_v9, %v368_v11 }
 0x1ff   : > { %v370_v15 = vadd.f32 %v574_v9, %v369_v13 }
 0x201   : > { %v374_v17 = vsel %vm373_vm10, %v574_v9, %v370_v15 }
 0x202   : > { %v379_v19 = vsel %vm376_vm11, %v378_v16, %v374_v17 }
 0x203   : > { %v380_v20 = vmul.f32 %v379_v19, %v347_v57 }
 0x205   : > { %v385_v22 = vmul.f32 %v565_v18, %v380_v20 }
 0x207   : > { %v390_v23 = vadd.f32 %v566_v21, %v385_v22 }
 0x209   : > { %391 = vst.msk [vmem:[%s258_s15] sm:$0xff] %vm268_vm0, %v390_v23 }
 0x20a   : > { %662 = shalt.err (!%p659_p9)
}
 0x20b   : > { %510 = dma.vmem_to_hbm [thread:$0]  (%p801_p13), %s406_s17, 128, %s408_s22, %s393_s27  }
 0x20c PF: > { %s419_s13 = sand.u32 1, %s693_s18   ;;  %p905_p10 = scmp.ge.s32.totalorder %s705_s21, 2 }
 0x20d   : > { %s420_s30 = scalar_lea.sflag [#allocation4], %s419_s13 }
 0x20e   : > { %p521_p11 = pnand %p905_p10, %p806_p4 }
 0x210   : > { %p522_p0 = pneg %p521_p11 }
 0x212   : > { %688 = dma.done.wait (%p522_p0), %s420_s30, 128  }
 0x213   : > { %690 = vsyncadd (%p522_p0), %s420_s30, 4294967168  ;;  %p19_p2 = scmp.ge.s32.totalorder %s781_s7, 4   ;;  %s906_s18 = smov %s697_s19 }
 0x214   : > { %s907_s19 = smov %s701_s20  ;;  %s908_s20 = smov %s793_s10 }
 0x215   : > { %s909_s21 = smov %s781_s7  ;;  %21 = sbr.rel (!%p19_p2) target bundleno = 6 (0x6), region = 89 }
 0x21a   :  { %426 = vsyncpa [#allocation3], 1 }
 0x21b   :  { %428 = vsyncpa [#allocation3 + $0x1], 1 }
 0x21c   :  { %429 = vsyncpa [#allocation6], 1 }
 0x21d   :  { %430 = vsyncpa [#allocation4], 1 }
 0x21e   :  { %432 = vsyncpa [#allocation4 + $0x1], 1 }

</bundles_post_ra>
